<compile_context>
chip_gen: v7x
topology: tpu7x:2x2x1
jax: 0.10.0
libtpu: 0.0.40
codegen_flags: <defaults>
</compile_context>

<pallas_src>
import functools

import jax
import jax.numpy as jnp
import numpy as np
from jax.experimental import pallas as pl
from jax.experimental.pallas import tpu as pltpu


# ----------------------- static interpolation weights (numpy, trace time) -----------------------

def _interp_taps(out_size: int, in_size: int):
    """align_corners=True 1-D linear taps: out[o] = w0[o]*in[lo[o]] + w1[o]*in[lo[o]+1]."""
    if out_size == 1 or in_size == 1:
        lo = np.zeros(out_size, np.int64)
        return lo, np.ones(out_size, np.float64), np.zeros(out_size, np.float64)
    pos = np.arange(out_size, dtype=np.float64) * (in_size - 1) / (out_size - 1)
    lo = np.clip(np.floor(pos).astype(np.int64), 0, in_size - 2)
    frac = pos - lo
    return lo, 1.0 - frac, frac


def _interp_matrix(out_size: int, in_size: int) -> np.ndarray:
    """(in_size, out_size) matrix M so that out_row = in_row @ M (align_corners=True)."""
    lo, w0, w1 = _interp_taps(out_size, in_size)
    hi = np.minimum(lo + 1, in_size - 1)
    cols = np.arange(out_size)
    m = np.zeros((in_size, out_size), np.float64)
    np.add.at(m, (lo, cols), w0)
    np.add.at(m, (hi, cols), w1)
    return m


def _round_up(v: int, m: int) -> int:
    return ((v + m - 1) // m) * m


def _padded_bytes(shape, dtype) -> int:
    """VMEM bytes of a buffer after (sublane, 128-lane) tiling of the last two dims."""
    itemsize = int(np.dtype(dtype).itemsize)
    sub = max(8, 32 // itemsize)            # f32 -> 8 sublanes, bf16 -> 16, int8 -> 32
    if len(shape) < 2:
        return _round_up(int(np.prod(shape, dtype=np.int64)) * itemsize, 512)
    lead = 1
    for s in shape[:-2]:
        lead *= int(s)
    return lead * _round_up(int(shape[-2]), sub) * _round_up(int(shape[-1]), 128) * itemsize


def _vmem_limit_bytes() -> int:
    cap = 64 * 1024 * 1024                  # conservative default = v7x per-core VMEM
    try:
        info = pltpu.get_tpu_info()
        cap = int(getattr(info, "vmem_capacity_bytes", cap))
    except Exception:
        pass
    # ~48 MiB scoped limit on v7x (64 MiB physical), ~96 MiB on v5e/v6e (128 MiB physical).
    return int(min((cap * 3) // 4, 100 * 1024 * 1024))


# ------------------------------------------ kernel ------------------------------------------

def _upsample_add_kernel(*refs, d_lo, d_w0, d_w1, learnable, fuse_hw, hw_dims):
    idx = 0
    if learnable:
        ab_ref = refs[idx]; idx += 1
        alpha = ab_ref[0]
        beta = ab_ref[1]
    x_ref = refs[idx]; idx += 1
    if fuse_hw:
        kron_ref = refs[idx]; idx += 1
    else:
        wwT_ref = refs[idx]
        whT_ref = refs[idx + 1]
        idx += 2
    skip_ref = refs[idx]
    out_ref = refs[idx + 1]

    tb, dx, hwx = x_ref.shape
    _, ds, hws = out_ref.shape

    xv = x_ref[...]                                               # native dtype (f32/bf16) -> MXU
    if fuse_hw:
        # H and W fused into one MXU matmul against the (Hx*Wx, Hs*Ws) Kronecker matrix.
        t = jnp.dot(xv.reshape(tb * dx, hwx), kron_ref[...],
                    preferred_element_type=jnp.float32)           # (tb*dx, hs*ws) f32
    else:
        # Separable fallback when the Kronecker matrix would be too large for VMEM.
        hx, wx, hs, ws = hw_dims
        t = jnp.dot(xv.reshape(tb * dx * hx, wx), wwT_ref[...],
                    preferred_element_type=jnp.float32)           # (tb*dx*hx, ws)
        t = jnp.swapaxes(t.reshape(tb * dx, hx, ws), 1, 2)        # (tb*dx, ws, hx)
        t = jnp.dot(t.reshape(tb * dx * ws, hx), whT_ref[...],
                    preferred_element_type=jnp.float32)           # (tb*dx*ws, hs)
        t = jnp.swapaxes(t.reshape(tb * dx, ws, hs), 1, 2).reshape(tb * dx, hws)
    t = t.reshape(tb, dx, hws)

    # D axis: <=2-tap lerp per output plane, fused with the scaled skip-add and the store.
    for o in range(ds):
        lo = d_lo[o]
        hi = min(lo + 1, dx - 1)
        w0 = d_w0[o]
        w1 = d_w1[o]
        t_lo = t[:, lo, :]
        if w1 == 0.0:                                             # exact input plane (w0 == 1)
            up = alpha * t_lo if learnable else t_lo
        else:
            t_hi = t[:, hi, :]
            if learnable:
                up = (alpha * w0) * t_lo + (alpha * w1) * t_hi
            else:
                up = w0 * t_lo + w1 * t_hi
        sk = skip_ref[:, o, :].astype(jnp.float32)
        res = up + (beta * sk if learnable else sk)
        out_ref[:, o, :] = res.astype(out_ref.dtype)


# ------------------------------------------ wrapper ------------------------------------------

@functools.partial(jax.jit, static_argnames=("learnable",))
def upsample_add(x, skip, alpha=0.5, beta=0.5, *, learnable=False):
    """Pallas TPU implementation of UpsampleAdd.forward.

    x:    (N, C, Dx, Hx, Wx)  low-res features
    skip: (N, C, Ds, Hs, Ws)  high-res skip features (target spatial size)
    """
    n, c, dx, hx, wx = x.shape
    n2, c2, ds, hs, ws = skip.shape
    assert (n, c) == (n2, c2)

    b = n * c
    hwx = hx * wx
    hws = hs * ws
    out_dtype = jnp.promote_types(x.dtype, skip.dtype)

    # Lane-dense views: last dim hs*ws / hx*wx (>=128 typically) -> unmasked stores, dense DMAs.
    x3 = x.reshape(b, dx, hwx)
    skip3 = skip.reshape(b, ds, hws)

    # bf16 feeds the MXU directly (f32 accumulation); anything else computes in f32.
    if x.dtype == jnp.bfloat16:
        mxu_dtype = jnp.bfloat16
    else:
        mxu_dtype = jnp.float32
        if x.dtype != jnp.float32:
            x3 = x3.astype(jnp.float32)

    # Static per-axis interpolation weights (align_corners=True).
    ww = _interp_matrix(ws, wx)                       # (wx, ws)
    wh = _interp_matrix(hs, hx)                       # (hx, hs)
    d_lo_np, d_w0_np, d_w1_np = _interp_taps(ds, dx)
    d_lo = tuple(int(v) for v in d_lo_np)
    d_w0 = tuple(float(v) for v in d_w0_np)
    d_w1 = tuple(float(v) for v in d_w1_np)

    # Fuse H and W into a single Kronecker matmul only when its matrix stays small in VMEM.
    kron_pad = _padded_bytes((hwx, hws), mxu_dtype)
    fuse_hw = kron_pad <= 4 * 1024 * 1024
    if fuse_hw:
        hw_mats = [jnp.asarray(np.kron(wh, ww), mxu_dtype)]       # (hx*wx, hs*ws)
        const_pad = 2 * kron_pad
    else:
        hw_mats = [jnp.asarray(ww, mxu_dtype), jnp.asarray(wh, jnp.float32)]
        const_pad = 2 * (_padded_bytes((wx, ws), mxu_dtype)
                         + _padded_bytes((hx, hs), jnp.float32))

    # ---- tile size: padded (sublane,128) bytes, double-buffered, against the VMEM limit. ----
    vmem_limit = _vmem_limit_bytes()
    x_pad = _padded_bytes((1, dx, hwx), x3.dtype)
    skip_pad = _padded_bytes((1, ds, hws), skip.dtype)
    out_pad = _padded_bytes((1, ds, hws), out_dtype)
    t_pad = _padded_bytes((dx, hws), jnp.float32)     # matmul result / relayout temps per row
    per_tb = 2 * x_pad + 2 * skip_pad + 2 * out_pad + x_pad + t_pad
    if not fuse_hw:
        per_tb += t_pad
    budget = max(0, vmem_limit // 2 - const_pad)      # keep ~50% headroom for compiler temps
    tb = max(1, budget // max(1, per_tb))
    # >=4 grid steps so both v7x TensorCores get >=2 steps each (prefetch/writeback overlap).
    if b >= 4:
        tb = min(tb, b // 4)
    elif b >= 2:
        tb = min(tb, b // 2)
    tb = max(1, min(tb, b))
    nblocks = pl.cdiv(b, tb)                          # ragged last block: padded rows are dropped
    # TODO(synk): for volumes where even tb=1 exceeds the VMEM budget, add a second grid axis
    # tiling the output depth Ds (full Dx slab per step) instead of only tiling N*C.

    kernel = functools.partial(
        _upsample_add_kernel, d_lo=d_lo, d_w0=d_w0, d_w1=d_w1,
        learnable=learnable, fuse_hw=fuse_hw, hw_dims=(hx, wx, hs, ws))

    in_specs = []
    inputs = []
    if learnable:
        ab = jnp.asarray([alpha, beta], jnp.float32)              # tiny scalar operand -> SMEM
        in_specs.append(pl.BlockSpec(memory_space=pltpu.MemorySpace.SMEM))
        inputs.append(ab)
    in_specs.append(pl.BlockSpec((tb, dx, hwx), lambda i: (i, 0, 0)))
    inputs.append(x3)
    for m in hw_mats:                                             # resident interp weights
        in_specs.append(pl.BlockSpec(m.shape, lambda i: (0, 0)))
        inputs.append(m)
    in_specs.append(pl.BlockSpec((tb, ds, hws), lambda i: (i, 0, 0)))
    inputs.append(skip3)

    out3 = pl.pallas_call(
        kernel,
        out_shape=jax.ShapeDtypeStruct((b, ds, hws), out_dtype),
        grid=(nblocks,),
        in_specs=in_specs,
        out_specs=pl.BlockSpec((tb, ds, hws), lambda i: (i, 0, 0)),
        compiler_params=pltpu.CompilerParams(
            dimension_semantics=("parallel",),
            vmem_limit_bytes=vmem_limit,
        ),
    )(*inputs)

    return out3.reshape(n, c, ds, hs, ws)


if __name__ == "__main__":
    key = jax.random.PRNGKey(0)
    kx, ks = jax.random.split(key)

    # Small shapes: batch=2, channels=4, x spatial (4, 8, 8) upsampled to skip (8, 16, 16).
    x = jax.random.normal(kx, (2, 4, 4, 8, 8), jnp.float32)
    skip = jax.random.normal(ks, (2, 4, 8, 16, 16), jnp.float32)
    alpha, beta = 0.5, 0.5                            # module __init__ defaults when learnable

    out = jax.block_until_ready(upsample_add(x, skip, alpha, beta, learnable=True))

    # Pure-JAX reference: separable trilinear interp (align_corners=True) + scaled add.
    wd = jnp.asarray(_interp_matrix(skip.shape[2], x.shape[2]), jnp.float32)
    wh = jnp.asarray(_interp_matrix(skip.shape[3], x.shape[3]), jnp.float32)
    ww = jnp.asarray(_interp_matrix(skip.shape[4], x.shape[4]), jnp.float32)
    ups_ref = jnp.einsum("do,hp,wq,ncdhw->ncopq", wd, wh, ww, x)
    expected = alpha * ups_ref + beta * skip
    np.testing.assert_allclose(np.asarray(out), np.asarray(expected), rtol=1e-5, atol=1e-5)

    # Non-learnable path (plain add, ignores alpha/beta as in the reference module).
    out2 = jax.block_until_ready(upsample_add(x, skip, learnable=False))
    np.testing.assert_allclose(np.asarray(out2), np.asarray(ups_ref + skip), rtol=1e-5, atol=1e-5)

    # bf16 path: inputs feed the MXU directly; loose tolerance vs the f32 reference.
    out_bf = jax.block_until_ready(
        upsample_add(x.astype(jnp.bfloat16), skip.astype(jnp.bfloat16), alpha, beta,
                     learnable=True))
    np.testing.assert_allclose(np.asarray(out_bf.astype(jnp.float32)), np.asarray(expected),
                               rtol=0.05, atol=0.08)

    print("KERNEL_OK")
</pallas_src>

<mosaic_0001>
module attributes {stable_mosaic.version = 11 : i64} {
  func.func @_upsample_add_kernel(%arg0: i32, %arg1: memref<2xf32, #tpu.memory_space<smem>>, %arg2: memref<2x4x64xf32, #tpu.memory_space<vmem>>, %arg3: memref<64x256xf32, #tpu.memory_space<vmem>>, %arg4: memref<2x8x256xf32, #tpu.memory_space<vmem>>, %arg5: memref<2x8x256xf32, #tpu.memory_space<vmem>>) attributes {dimension_semantics = [#tpu.dimension_semantics<parallel>], iteration_bounds = array<i64: 4>, scalar_prefetch = 0 : i64, scratch_operands = 0 : i64, tpu.core_type = #tpu.core_type<tc>, window_params = [{transform_indices = @transform_0, window_bounds = array<i64: 2>}, {transform_indices = @transform_1, window_bounds = array<i64: 2, 4, 64>}, {pipeline_mode = #tpu.pipeline_mode<synchronous>, transform_indices = @transform_2, window_bounds = array<i64: 64, 256>}, {transform_indices = @transform_3, window_bounds = array<i64: 2, 8, 256>}, {transform_indices = @transform_4, window_bounds = array<i64: 2, 8, 256>}]} {
    %c0 = arith.constant 0 : index
    %0 = memref.load %arg1[%c0] : memref<2xf32, #tpu.memory_space<smem>>
    %c1 = arith.constant 1 : index
    %1 = memref.load %arg1[%c1] : memref<2xf32, #tpu.memory_space<smem>>
    %c0_0 = arith.constant 0 : index
    %c0_1 = arith.constant 0 : index
    %c0_2 = arith.constant 0 : index
    %2 = vector.load %arg2[%c0_0, %c0_1, %c0_2] : memref<2x4x64xf32, #tpu.memory_space<vmem>>, vector<2x4x64xf32>
    %3 = vector.shape_cast %2 : vector<2x4x64xf32> to vector<8x64xf32>
    %c0_3 = arith.constant 0 : index
    %c0_4 = arith.constant 0 : index
    %4 = vector.load %arg3[%c0_3, %c0_4] : memref<64x256xf32, #tpu.memory_space<vmem>>, vector<64x256xf32>
    %cst = arith.constant dense<0.000000e+00> : vector<8x256xf32>
    %5 = tpu.matmul %3, %4, %cst {dimension_numbers = #tpu.dot_dimension_numbers<[1], [0], [0], [1], [0, 0, 1, 1], [], []>} : vector<8x64xf32>, vector<64x256xf32>, vector<8x256xf32> -> vector<8x256xf32>
    %6 = vector.shape_cast %5 : vector<8x256xf32> to vector<2x4x256xf32>
    %7 = vector.extract_strided_slice %6 {offsets = [0, 0, 0], sizes = [2, 1, 256], strides = [1, 1, 1]} : vector<2x4x256xf32> to vector<2x1x256xf32>
    %8 = vector.shape_cast %7 : vector<2x1x256xf32> to vector<2x256xf32>
    %9 = vector.broadcast %0 : f32 to vector<2x256xf32>
    %10 = arith.mulf %9, %8 : vector<2x256xf32>
    %c0_5 = arith.constant 0 : index
    %c0_6 = arith.constant 0 : index
    %c0_7 = arith.constant 0 : index
    %11 = vector.load %arg4[%c0_5, %c0_6, %c0_7] : memref<2x8x256xf32, #tpu.memory_space<vmem>>, vector<2x1x256xf32>
    %12 = vector.shape_cast %11 : vector<2x1x256xf32> to vector<2x256xf32>
    %13 = vector.broadcast %1 : f32 to vector<2x256xf32>
    %14 = arith.mulf %13, %12 : vector<2x256xf32>
    %15 = arith.addf %10, %14 : vector<2x256xf32>
    %c0_8 = arith.constant 0 : index
    %c0_9 = arith.constant 0 : index
    %c0_10 = arith.constant 0 : index
    %16 = vector.load %arg5[%c0_8, %c0_9, %c0_10] : memref<2x8x256xf32, #tpu.memory_space<vmem>>, vector<2x1x256xf32>
    %17 = vector.shape_cast %16 : vector<2x1x256xf32> to vector<2x256xf32>
    %18 = vector.shape_cast %15 : vector<2x256xf32> to vector<2x1x256xf32>
    tpu.vector_store %arg5[%c0_8, %c0_9, %c0_10], %18 {strides = array<i32>} : memref<2x8x256xf32, #tpu.memory_space<vmem>>, vector<2x1x256xf32>,
    %19 = vector.extract_strided_slice %6 {offsets = [0, 0, 0], sizes = [2, 1, 256], strides = [1, 1, 1]} : vector<2x4x256xf32> to vector<2x1x256xf32>
    %20 = vector.shape_cast %19 : vector<2x1x256xf32> to vector<2x256xf32>
    %21 = vector.extract_strided_slice %6 {offsets = [0, 1, 0], sizes = [2, 1, 256], strides = [1, 1, 1]} : vector<2x4x256xf32> to vector<2x1x256xf32>
    %22 = vector.shape_cast %21 : vector<2x1x256xf32> to vector<2x256xf32>
    %cst_11 = arith.constant 0.571428597 : f32
    %23 = arith.mulf %0, %cst_11 : f32
    %24 = vector.broadcast %23 : f32 to vector<2x256xf32>
    %25 = arith.mulf %24, %20 : vector<2x256xf32>
    %cst_12 = arith.constant 0.428571433 : f32
    %26 = arith.mulf %0, %cst_12 : f32
    %27 = vector.broadcast %26 : f32 to vector<2x256xf32>
    %28 = arith.mulf %27, %22 : vector<2x256xf32>
    %29 = arith.addf %25, %28 : vector<2x256xf32>
    %c0_13 = arith.constant 0 : index
    %c1_14 = arith.constant 1 : index
    %c0_15 = arith.constant 0 : index
    %30 = vector.load %arg4[%c0_13, %c1_14, %c0_15] : memref<2x8x256xf32, #tpu.memory_space<vmem>>, vector<2x1x256xf32>
    %31 = vector.shape_cast %30 : vector<2x1x256xf32> to vector<2x256xf32>
    %32 = vector.broadcast %1 : f32 to vector<2x256xf32>
    %33 = arith.mulf %32, %31 : vector<2x256xf32>
    %34 = arith.addf %29, %33 : vector<2x256xf32>
    %c0_16 = arith.constant 0 : index
    %c1_17 = arith.constant 1 : index
    %c0_18 = arith.constant 0 : index
    %35 = vector.load %arg5[%c0_16, %c1_17, %c0_18] : memref<2x8x256xf32, #tpu.memory_space<vmem>>, vector<2x1x256xf32>
    %36 = vector.shape_cast %35 : vector<2x1x256xf32> to vector<2x256xf32>
    %37 = vector.shape_cast %34 : vector<2x256xf32> to vector<2x1x256xf32>
    tpu.vector_store %arg5[%c0_16, %c1_17, %c0_18], %37 {strides = array<i32>} : memref<2x8x256xf32, #tpu.memory_space<vmem>>, vector<2x1x256xf32>,
    %38 = vector.extract_strided_slice %6 {offsets = [0, 0, 0], sizes = [2, 1, 256], strides = [1, 1, 1]} : vector<2x4x256xf32> to vector<2x1x256xf32>
    %39 = vector.shape_cast %38 : vector<2x1x256xf32> to vector<2x256xf32>
    %40 = vector.extract_strided_slice %6 {offsets = [0, 1, 0], sizes = [2, 1, 256], strides = [1, 1, 1]} : vector<2x4x256xf32> to vector<2x1x256xf32>
    %41 = vector.shape_cast %40 : vector<2x1x256xf32> to vector<2x256xf32>
    %cst_19 = arith.constant 0.142857149 : f32
    %42 = arith.mulf %0, %cst_19 : f32
    %43 = vector.broadcast %42 : f32 to vector<2x256xf32>
    %44 = arith.mulf %43, %39 : vector<2x256xf32>
    %cst_20 = arith.constant 0.857142865 : f32
    %45 = arith.mulf %0, %cst_20 : f32
    %46 = vector.broadcast %45 : f32 to vector<2x256xf32>
    %47 = arith.mulf %46, %41 : vector<2x256xf32>
    %48 = arith.addf %44, %47 : vector<2x256xf32>
    %c0_21 = arith.constant 0 : index
    %c2 = arith.constant 2 : index
    %c0_22 = arith.constant 0 : index
    %49 = vector.load %arg4[%c0_21, %c2, %c0_22] : memref<2x8x256xf32, #tpu.memory_space<vmem>>, vector<2x1x256xf32>
    %50 = vector.shape_cast %49 : vector<2x1x256xf32> to vector<2x256xf32>
    %51 = vector.broadcast %1 : f32 to vector<2x256xf32>
    %52 = arith.mulf %51, %50 : vector<2x256xf32>
    %53 = arith.addf %48, %52 : vector<2x256xf32>
    %c0_23 = arith.constant 0 : index
    %c2_24 = arith.constant 2 : index
    %c0_25 = arith.constant 0 : index
    %54 = vector.load %arg5[%c0_23, %c2_24, %c0_25] : memref<2x8x256xf32, #tpu.memory_space<vmem>>, vector<2x1x256xf32>
    %55 = vector.shape_cast %54 : vector<2x1x256xf32> to vector<2x256xf32>
    %56 = vector.shape_cast %53 : vector<2x256xf32> to vector<2x1x256xf32>
    tpu.vector_store %arg5[%c0_23, %c2_24, %c0_25], %56 {strides = array<i32>} : memref<2x8x256xf32, #tpu.memory_space<vmem>>, vector<2x1x256xf32>,
    %57 = vector.extract_strided_slice %6 {offsets = [0, 1, 0], sizes = [2, 1, 256], strides = [1, 1, 1]} : vector<2x4x256xf32> to vector<2x1x256xf32>
    %58 = vector.shape_cast %57 : vector<2x1x256xf32> to vector<2x256xf32>
    %59 = vector.extract_strided_slice %6 {offsets = [0, 2, 0], sizes = [2, 1, 256], strides = [1, 1, 1]} : vector<2x4x256xf32> to vector<2x1x256xf32>
    %60 = vector.shape_cast %59 : vector<2x1x256xf32> to vector<2x256xf32>
    %cst_26 = arith.constant 0.714285731 : f32
    %61 = arith.mulf %0, %cst_26 : f32
    %62 = vector.broadcast %61 : f32 to vector<2x256xf32>
    %63 = arith.mulf %62, %58 : vector<2x256xf32>
    %cst_27 = arith.constant 0.285714298 : f32
    %64 = arith.mulf %0, %cst_27 : f32
    %65 = vector.broadcast %64 : f32 to vector<2x256xf32>
    %66 = arith.mulf %65, %60 : vector<2x256xf32>
    %67 = arith.addf %63, %66 : vector<2x256xf32>
    %c0_28 = arith.constant 0 : index
    %c3 = arith.constant 3 : index
    %c0_29 = arith.constant 0 : index
    %68 = vector.load %arg4[%c0_28, %c3, %c0_29] : memref<2x8x256xf32, #tpu.memory_space<vmem>>, vector<2x1x256xf32>
    %69 = vector.shape_cast %68 : vector<2x1x256xf32> to vector<2x256xf32>
    %70 = vector.broadcast %1 : f32 to vector<2x256xf32>
    %71 = arith.mulf %70, %69 : vector<2x256xf32>
    %72 = arith.addf %67, %71 : vector<2x256xf32>
    %c0_30 = arith.constant 0 : index
    %c3_31 = arith.constant 3 : index
    %c0_32 = arith.constant 0 : index
    %73 = vector.load %arg5[%c0_30, %c3_31, %c0_32] : memref<2x8x256xf32, #tpu.memory_space<vmem>>, vector<2x1x256xf32>
    %74 = vector.shape_cast %73 : vector<2x1x256xf32> to vector<2x256xf32>
    %75 = vector.shape_cast %72 : vector<2x256xf32> to vector<2x1x256xf32>
    tpu.vector_store %arg5[%c0_30, %c3_31, %c0_32], %75 {strides = array<i32>} : memref<2x8x256xf32, #tpu.memory_space<vmem>>, vector<2x1x256xf32>,
    %76 = vector.extract_strided_slice %6 {offsets = [0, 1, 0], sizes = [2, 1, 256], strides = [1, 1, 1]} : vector<2x4x256xf32> to vector<2x1x256xf32>
    %77 = vector.shape_cast %76 : vector<2x1x256xf32> to vector<2x256xf32>
    %78 = vector.extract_strided_slice %6 {offsets = [0, 2, 0], sizes = [2, 1, 256], strides = [1, 1, 1]} : vector<2x4x256xf32> to vector<2x1x256xf32>
    %79 = vector.shape_cast %78 : vector<2x1x256xf32> to vector<2x256xf32>
    %cst_33 = arith.constant 0.285714298 : f32
    %80 = arith.mulf %0, %cst_33 : f32
    %81 = vector.broadcast %80 : f32 to vector<2x256xf32>
    %82 = arith.mulf %81, %77 : vector<2x256xf32>
    %cst_34 = arith.constant 0.714285731 : f32
    %83 = arith.mulf %0, %cst_34 : f32
    %84 = vector.broadcast %83 : f32 to vector<2x256xf32>
    %85 = arith.mulf %84, %79 : vector<2x256xf32>
    %86 = arith.addf %82, %85 : vector<2x256xf32>
    %c0_35 = arith.constant 0 : index
    %c4 = arith.constant 4 : index
    %c0_36 = arith.constant 0 : index
    %87 = vector.load %arg4[%c0_35, %c4, %c0_36] : memref<2x8x256xf32, #tpu.memory_space<vmem>>, vector<2x1x256xf32>
    %88 = vector.shape_cast %87 : vector<2x1x256xf32> to vector<2x256xf32>
    %89 = vector.broadcast %1 : f32 to vector<2x256xf32>
    %90 = arith.mulf %89, %88 : vector<2x256xf32>
    %91 = arith.addf %86, %90 : vector<2x256xf32>
    %c0_37 = arith.constant 0 : index
    %c4_38 = arith.constant 4 : index
    %c0_39 = arith.constant 0 : index
    %92 = vector.load %arg5[%c0_37, %c4_38, %c0_39] : memref<2x8x256xf32, #tpu.memory_space<vmem>>, vector<2x1x256xf32>
    %93 = vector.shape_cast %92 : vector<2x1x256xf32> to vector<2x256xf32>
    %94 = vector.shape_cast %91 : vector<2x256xf32> to vector<2x1x256xf32>
    tpu.vector_store %arg5[%c0_37, %c4_38, %c0_39], %94 {strides = array<i32>} : memref<2x8x256xf32, #tpu.memory_space<vmem>>, vector<2x1x256xf32>,
    %95 = vector.extract_strided_slice %6 {offsets = [0, 2, 0], sizes = [2, 1, 256], strides = [1, 1, 1]} : vector<2x4x256xf32> to vector<2x1x256xf32>
    %96 = vector.shape_cast %95 : vector<2x1x256xf32> to vector<2x256xf32>
    %97 = vector.extract_strided_slice %6 {offsets = [0, 3, 0], sizes = [2, 1, 256], strides = [1, 1, 1]} : vector<2x4x256xf32> to vector<2x1x256xf32>
    %98 = vector.shape_cast %97 : vector<2x1x256xf32> to vector<2x256xf32>
    %cst_40 = arith.constant 0.857142865 : f32
    %99 = arith.mulf %0, %cst_40 : f32
    %100 = vector.broadcast %99 : f32 to vector<2x256xf32>
    %101 = arith.mulf %100, %96 : vector<2x256xf32>
    %cst_41 = arith.constant 0.142857149 : f32
    %102 = arith.mulf %0, %cst_41 : f32
    %103 = vector.broadcast %102 : f32 to vector<2x256xf32>
    %104 = arith.mulf %103, %98 : vector<2x256xf32>
    %105 = arith.addf %101, %104 : vector<2x256xf32>
    %c0_42 = arith.constant 0 : index
    %c5 = arith.constant 5 : index
    %c0_43 = arith.constant 0 : index
    %106 = vector.load %arg4[%c0_42, %c5, %c0_43] : memref<2x8x256xf32, #tpu.memory_space<vmem>>, vector<2x1x256xf32>
    %107 = vector.shape_cast %106 : vector<2x1x256xf32> to vector<2x256xf32>
    %108 = vector.broadcast %1 : f32 to vector<2x256xf32>
    %109 = arith.mulf %108, %107 : vector<2x256xf32>
    %110 = arith.addf %105, %109 : vector<2x256xf32>
    %c0_44 = arith.constant 0 : index
    %c5_45 = arith.constant 5 : index
    %c0_46 = arith.constant 0 : index
    %111 = vector.load %arg5[%c0_44, %c5_45, %c0_46] : memref<2x8x256xf32, #tpu.memory_space<vmem>>, vector<2x1x256xf32>
    %112 = vector.shape_cast %111 : vector<2x1x256xf32> to vector<2x256xf32>
    %113 = vector.shape_cast %110 : vector<2x256xf32> to vector<2x1x256xf32>
    tpu.vector_store %arg5[%c0_44, %c5_45, %c0_46], %113 {strides = array<i32>} : memref<2x8x256xf32, #tpu.memory_space<vmem>>, vector<2x1x256xf32>,
    %114 = vector.extract_strided_slice %6 {offsets = [0, 2, 0], sizes = [2, 1, 256], strides = [1, 1, 1]} : vector<2x4x256xf32> to vector<2x1x256xf32>
    %115 = vector.shape_cast %114 : vector<2x1x256xf32> to vector<2x256xf32>
    %116 = vector.extract_strided_slice %6 {offsets = [0, 3, 0], sizes = [2, 1, 256], strides = [1, 1, 1]} : vector<2x4x256xf32> to vector<2x1x256xf32>
    %117 = vector.shape_cast %116 : vector<2x1x256xf32> to vector<2x256xf32>
    %cst_47 = arith.constant 0.428571433 : f32
    %118 = arith.mulf %0, %cst_47 : f32
    %119 = vector.broadcast %118 : f32 to vector<2x256xf32>
    %120 = arith.mulf %119, %115 : vector<2x256xf32>
    %cst_48 = arith.constant 0.571428597 : f32
    %121 = arith.mulf %0, %cst_48 : f32
    %122 = vector.broadcast %121 : f32 to vector<2x256xf32>
    %123 = arith.mulf %122, %117 : vector<2x256xf32>
    %124 = arith.addf %120, %123 : vector<2x256xf32>
    %c0_49 = arith.constant 0 : index
    %c6 = arith.constant 6 : index
    %c0_50 = arith.constant 0 : index
    %125 = vector.load %arg4[%c0_49, %c6, %c0_50] : memref<2x8x256xf32, #tpu.memory_space<vmem>>, vector<2x1x256xf32>
    %126 = vector.shape_cast %125 : vector<2x1x256xf32> to vector<2x256xf32>
    %127 = vector.broadcast %1 : f32 to vector<2x256xf32>
    %128 = arith.mulf %127, %126 : vector<2x256xf32>
    %129 = arith.addf %124, %128 : vector<2x256xf32>
    %c0_51 = arith.constant 0 : index
    %c6_52 = arith.constant 6 : index
    %c0_53 = arith.constant 0 : index
    %130 = vector.load %arg5[%c0_51, %c6_52, %c0_53] : memref<2x8x256xf32, #tpu.memory_space<vmem>>, vector<2x1x256xf32>
    %131 = vector.shape_cast %130 : vector<2x1x256xf32> to vector<2x256xf32>
    %132 = vector.shape_cast %129 : vector<2x256xf32> to vector<2x1x256xf32>
    tpu.vector_store %arg5[%c0_51, %c6_52, %c0_53], %132 {strides = array<i32>} : memref<2x8x256xf32, #tpu.memory_space<vmem>>, vector<2x1x256xf32>,
    %133 = vector.extract_strided_slice %6 {offsets = [0, 2, 0], sizes = [2, 1, 256], strides = [1, 1, 1]} : vector<2x4x256xf32> to vector<2x1x256xf32>
    %134 = vector.shape_cast %133 : vector<2x1x256xf32> to vector<2x256xf32>
    %135 = vector.extract_strided_slice %6 {offsets = [0, 3, 0], sizes = [2, 1, 256], strides = [1, 1, 1]} : vector<2x4x256xf32> to vector<2x1x256xf32>
    %136 = vector.shape_cast %135 : vector<2x1x256xf32> to vector<2x256xf32>
    %cst_54 = arith.constant 0.000000e+00 : f32
    %137 = arith.mulf %0, %cst_54 : f32
    %138 = vector.broadcast %137 : f32 to vector<2x256xf32>
    %139 = arith.mulf %138, %134 : vector<2x256xf32>
    %cst_55 = arith.constant 1.000000e+00 : f32
    %140 = arith.mulf %0, %cst_55 : f32
    %141 = vector.broadcast %140 : f32 to vector<2x256xf32>
    %142 = arith.mulf %141, %136 : vector<2x256xf32>
    %143 = arith.addf %139, %142 : vector<2x256xf32>
    %c0_56 = arith.constant 0 : index
    %c7 = arith.constant 7 : index
    %c0_57 = arith.constant 0 : index
    %144 = vector.load %arg4[%c0_56, %c7, %c0_57] : memref<2x8x256xf32, #tpu.memory_space<vmem>>, vector<2x1x256xf32>
    %145 = vector.shape_cast %144 : vector<2x1x256xf32> to vector<2x256xf32>
    %146 = vector.broadcast %1 : f32 to vector<2x256xf32>
    %147 = arith.mulf %146, %145 : vector<2x256xf32>
    %148 = arith.addf %143, %147 : vector<2x256xf32>
    %c0_58 = arith.constant 0 : index
    %c7_59 = arith.constant 7 : index
    %c0_60 = arith.constant 0 : index
    %149 = vector.load %arg5[%c0_58, %c7_59, %c0_60] : memref<2x8x256xf32, #tpu.memory_space<vmem>>, vector<2x1x256xf32>
    %150 = vector.shape_cast %149 : vector<2x1x256xf32> to vector<2x256xf32>
    %151 = vector.shape_cast %148 : vector<2x256xf32> to vector<2x1x256xf32>
    tpu.vector_store %arg5[%c0_58, %c7_59, %c0_60], %151 {strides = array<i32>} : memref<2x8x256xf32, #tpu.memory_space<vmem>>, vector<2x1x256xf32>,
    return
  }
  func.func @transform_0(%arg0: i32) -> i32 {
    %c0_i32 = arith.constant 0 : i32
    %c0_i32_0 = arith.constant 0 : i32
    return %c0_i32 : i32
  }
  func.func @transform_1(%arg0: i32) -> (i32, i32, i32) {
    %c0_i32 = arith.constant 0 : i32
    %c0_i32_0 = arith.constant 0 : i32
    %c0_i32_1 = arith.constant 0 : i32
    return %arg0, %c0_i32, %c0_i32_0 : i32, i32, i32
  }
  func.func @transform_2(%arg0: i32) -> (i32, i32) {
    %c0_i32 = arith.constant 0 : i32
    %c0_i32_0 = arith.constant 0 : i32
    %c0_i32_1 = arith.constant 0 : i32
    return %c0_i32, %c0_i32_0 : i32, i32
  }
  func.func @transform_3(%arg0: i32) -> (i32, i32, i32) {
    %c0_i32 = arith.constant 0 : i32
    %c0_i32_0 = arith.constant 0 : i32
    %c0_i32_1 = arith.constant 0 : i32
    return %arg0, %c0_i32, %c0_i32_0 : i32, i32, i32
  }
  func.func @transform_4(%arg0: i32) -> (i32, i32, i32) {
    %c0_i32 = arith.constant 0 : i32
    %c0_i32_0 = arith.constant 0 : i32
    %c0_i32_1 = arith.constant 0 : i32
    return %arg0, %c0_i32, %c0_i32_0 : i32, i32, i32
  }
}

</mosaic_0001>

<bundles_post_ra>
// kernel: upsample_add.1
= control target key start
LH: loop header
LB: loop body
LE: loop exit
PB: predicated region body
PF: predicated region fallthrough
CT: control target
= control target key end

     0   :  { %9 = vsyncpa [#allocation3], 0  ;;  %s1213_s15 = smov 0   ;;  %s1585_s0 = inlined_call_operand.vmem [shape: f32[2], index: 0, kind: input, shape index: {}]   ;;  %s1586_s1 = inlined_call_operand.vmem [shape: f32[8,4,64], index: 1, kind: input, shape index: {}]   ;;  %s1587_s2 = inlined_call_operand.vmem [shape: f32[64,256], index: 2, kind: input, shape index: {}]   ;;  %s1588_s3 = inlined_call_operand.vmem [shape: f32[8,8,256], index: 3, kind: input, shape index: {}]   ;;  %s1589_s4 = inlined_call_operand.vmem [shape: f32[8,8,256], index: 4, kind: output, shape index: {}]  }
   0x1 LB: > { %s1053_s16 = sadd.s32 4294967295, %s1182_s15   ;;  %p1055_p0 = scmp.ge.s32.totalorder %s1182_s15, 1  ;;  %s1182_s15 = sphi %s1213_s15, %s15_s15  }
   0x2   : > { %p140_p1 = scmp.lt.s32.totalorder %s1182_s15, 5  ;;  %s153_s19 = sshll.u32 %s1585_s0, 4  ;;  %s154_s19 = int_to_ptr.vmem [resolvable:$true] %s153_s19 }
   0x3   : > { %p1228_p3 = scmp.eq.s32.totalorder %s1053_s16, 0  ;;  %s1157_s22 = scalar_lea.vmem %s154_s19, 16 }
   0x4   : > { %p1224_p2 = pnand %p1055_p0, %p140_p1  ;;  %p1158_p6 = scmp.ne.s32.totalorder %s154_s19, %s1157_s22 }
   0x5   : > { %p1165_p10 = scmp.lt.s32.totalorder %s154_s19, %s154_s19  ;;  %p1166_p11 = scmp.lt.s32.totalorder %s1157_s22, %s1157_s22 }
   0x6   : > { %p1138_p4 = pneg %p1224_p2 }
   0x7   : > { %p1167_p12 = por %p1166_p11, %p1165_p10 }
   0x8   : > { %p1139_p5 = pnand %p1228_p3, %p1138_p4 }
   0xa   : > { %p1159_p7 = pneg %p1139_p5 }
   0xc   : > { %p1160_p8 = pnand %p1159_p7, %p1158_p6 }
   0xe   : > { %p1161_p9 = pneg %p1160_p8 }
  0x10   : > { %p1168_p13 = pnand %p1167_p12, %p1161_p9 }
  0x12   : > { %1171 = shalt.err (!%p1168_p13)
}
  0x13   : > { %s1184_s23 = smov [#allocation2]   ;;  %188 = sbr.rel (%p1224_p2) target bundleno = 297 (0x129), region = 36 }
  0x14   : > { %1141 = dma.vmem_to_smem (!%p1139_p5), %s154_s19, 16, %s1184_s23, [#allocation3]  }
  0x1a   : > { %1177 = dma.done.wait (%p1228_p3), [#allocation3], 16  }
  0x1b   : > { %1179 = vsyncadd (%p1228_p3), [#allocation3], 4294967280 }
  0x1c   : > { %194 = sfence }
  0x1d   : > { %v247_v0 = vld [vmem:[%s1587_s2 + $0x8] sm:$0xff]  ;;  %v249_v1 = vld [vmem:[%s1587_s2 + $0x18] sm:$0xff]  ;;  %v246_v2 = vld [vmem:[%s1587_s2] sm:$0xff]  ;;  %s1060_s30 = sshll.u32 %s1053_s16, 1  ;;  %v1185_v7 = vmov 0.0   ;;  %vm265_vm0 = vcmask 523264   ;;  %v359_v28 = vlaneseq }
  0x1e   : > { %v1118_v3 = vpack.c.bf16 %v249_v1, %v247_v0  ;;  %v248_v4 = vld [vmem:[%s1587_s2 + $0x10] sm:$0xff]  ;;  %v251_v5 = vld [vmem:[%s1587_s2 + $0x28] sm:$0xff]  ;;  %v253_v6 = vld [vmem:[%s1587_s2 + $0x38] sm:$0xff]  ;;  %332 = vmatprep.mubr.f32.mxu0 %v1185_v7  ;;  %p223_p0 = scmp.lt.s32.totalorder %s1060_s30, 7  ;;  %s1296_s11 = sld [smem:[#allocation2]]  ;;  %v1186_v26 = vmov 286326784  }
  0x1f   : > { %v1120_v8 = vpack.c.bf16 %v248_v4, %v246_v2  ;;  %v1122_v9 = vpack.c.bf16 %v253_v6, %v251_v5  ;;  %v250_v10 = vld [vmem:[%s1587_s2 + $0x20] sm:$0xff]  ;;  %v252_v11 = vld [vmem:[%s1587_s2 + $0x30] sm:$0xff]  ;;  %v255_v12 = vld [vmem:[%s1587_s2 + $0x48] sm:$0xff]  ;;  %s1068_s12 = sld [smem:[#allocation2 + $0x1]]  ;;  %v357_v27 = vunpack.c.l.s4 %v1186_v26  ;;  %v360_v31 = vshrl.u32 %v359_v28, 7 }
  0x20   : > { %1119 = vmatprep.subr.bf16.mxu0 %v1118_v3  ;;  %v257_v13 = vld [vmem:[%s1587_s2 + $0x58] sm:$0xff]  ;;  %s1595_s30 = smov (!%p223_p0, %s1060_s30), 7  ;;  %v1124_v14 = vpack.c.bf16 %v252_v11, %v250_v10  ;;  %v254_v16 = vld [vmem:[%s1587_s2 + $0x40] sm:$0xff]  ;;  %v256_v17 = vld [vmem:[%s1587_s2 + $0x50] sm:$0xff]  ;;  %v1187_v34 = vmov 1966171168  }
  0x21   : > { %1121 = vmatpush1.bf16.msra.mxu0 %v1120_v8  ;;  %v1126_v15 = vpack.c.bf16 %v257_v13, %v255_v12  ;;  %s1061_s24 = sshll.u32 %s1595_s30, 2  ;;  %v259_v18 = vld [vmem:[%s1587_s2 + $0x68] sm:$0xff]  ;;  %v261_v19 = vld [vmem:[%s1587_s2 + $0x78] sm:$0xff]  ;;  %v1128_v20 = vpack.c.bf16 %v256_v17, %v254_v16  ;;  %v258_v22 = vld [vmem:[%s1587_s2 + $0x60] sm:$0xff]  ;;  %s1116_s13 = sshll.u32 %s1595_s30, 4  ;;  %v358_v30 = vunpack.c.0.s8 %v357_v27  ;;  %v377_v35 = vunpack.c.l.s4 %v1187_v34 }
  0x22   : > { %1123 = vmatprep.subr.bf16.mxu0 %v1122_v9  ;;  %s226_s6 = scalar_lea.vmem %s1586_s1, %s1061_s24  ;;  %v1130_v21 = vpack.c.bf16 %v261_v19, %v259_v18  ;;  %v260_v23 = vld [vmem:[%s1587_s2 + $0x70] sm:$0xff]  ;;  %s1304_s17 = scalar_lea.vmem %s1588_s3, %s1116_s13  ;;  %vm1390_vm1 = vcmp.lt.s32.totalorder %v359_v28, 256 }
  0x23   : > { %v1132_v24 = vpack.c.bf16 %v260_v23, %v258_v22  ;;  %v1156_v25 = vld [vmem:[%s226_s6] sm:$0xff]   ;;  %v1070_v32 = vld [vmem:[%s1304_s17 + $0x10] ss:$8 sm:$0x3]  ;;  %v1321_v41 = vsub.s32 %v358_v30, %v360_v31  ;;  %v378_v43 = vunpack.c.0.s8 %v377_v35  ;;  %s1457_s27 = scalar_lea.vmem %s1589_s4, %s1116_s13 }
  0x24   : > { %s415_s18 = smul.f32 0.5714286, %s1296_s11  ;;  %v348_v29 = vld [vmem:[%s1304_s17] ss:$8 sm:$0x3]  ;;  %v345_v49 = vstv %s1296_s11 }
  0x25   : > { %1125 = vmatpush1.bf16.msra.mxu0 %v1124_v14  ;;  %s419_s19 = smul.f32 0.42857143, %s1296_s11  ;;  %v351_v33 = vstv %s1068_s12  ;;  %v1074_v36 = vld [vmem:[%s1304_s17 + $0x1] ss:$8 sm:$0x3]  ;;  %v1348_v61 = vsub.s32 %v378_v43, %v360_v31 }
  0x26   : > { %1127 = vmatprep.subr.bf16.mxu0 %v1126_v15  ;;  %s497_s20 = smul.f32 0.14285715, %s1296_s11  ;;  %v1075_v37 = vld [vmem:[%s1304_s17 + $0x11] ss:$8 sm:$0x3]  ;;  %v1317_v39 = vmul.f32 %v351_v33, %v348_v29  ;;  %v1319_v40 = vmul.f32 %v1070_v32, %v351_v33  ;;  %v1327_v46 = vmul.f32 %v1074_v36, %v351_v33  ;;  %v416_v50 = vstv %s415_s18 }
  0x27   : > { %s501_s21 = smul.f32 0.85714287, %s1296_s11  ;;  %v1080_v38 = vld [vmem:[%s1304_s17 + $0x2] ss:$8 sm:$0x3]  ;;  %v1332_v51 = vmul.f32 %v1075_v37, %v351_v33  ;;  %v420_v57 = vstv %s419_s19 }
  0x28   : > { %s579_s22 = smul.f32 0.71428573, %s1296_s11  ;;  %v1081_v42 = vld [vmem:[%s1304_s17 + $0x12] ss:$8 sm:$0x3]  ;;  %v1334_v52 = vmul.f32 %v1080_v38, %v351_v33  ;;  %v362_v55 = vrot.slane %v1317_v39, %v1321_v41  ;;  %v369_v56 = vrot.slane %v1319_v40, %v1321_v41  ;;  %v498_v58 = vstv %s497_s20 }
  0x29   : > { %1129 = vmatpush1.bf16.msra.mxu0 %v1128_v20  ;;  %s583_s23 = smul.f32 0.2857143, %s1296_s11  ;;  %v1086_v44 = vld [vmem:[%s1304_s17 + $0x3] ss:$8 sm:$0x3]  ;;  %v502_v62 = vstv %s501_s21  ;;  %v1350_v63 = vmul.f32 %v1081_v42, %v351_v33  ;;  %v447_v3 = vrot.slane %v1327_v46, %v1321_v41  ;;  %v454_v7 = vrot.slane %v1332_v51, %v1321_v41 }
  0x2a   : > { %1131 = vmatprep.subr.bf16.mxu0 %v1130_v21  ;;  %v1087_v45 = vld [vmem:[%s1304_s17 + $0x13] ss:$8 sm:$0x3]  ;;  %v1092_v47 = vld [vmem:[%s1304_s17 + $0x4] ss:$8 sm:$0x3]  ;;  %v1352_v0 = vmul.f32 %v1086_v44, %v351_v33  ;;  %v529_v8 = vrot.slane %v1334_v52, %v1321_v41  ;;  %v580_v17 = vstv %s579_s22 }
  0x2b   : > { %v1093_v48 = vld [vmem:[%s1304_s17 + $0x14] ss:$8 sm:$0x3]  ;;  %v1098_v53 = vld [vmem:[%s1304_s17 + $0x5] ss:$8 sm:$0x3]  ;;  %v1358_v4 = vmul.f32 %v1087_v45, %v351_v33  ;;  %v1360_v5 = vmul.f32 %v1092_v47, %v351_v33  ;;  %v536_v16 = vrot.slane %v1350_v63, %v1321_v41  ;;  %v584_v18 = vstv %s583_s23 }
  0x2c   : > { %v1099_v54 = vld [vmem:[%s1304_s17 + $0x15] ss:$8 sm:$0x3]  ;;  %v1104_v59 = vld [vmem:[%s1304_s17 + $0x6] ss:$8 sm:$0x3]  ;;  %v1362_v6 = vmul.f32 %v1093_v48, %v351_v33  ;;  %v1369_v9 = vmul.f32 %v1098_v53, %v351_v33  ;;  %v611_v19 = vrot.slane %v1352_v0, %v1321_v41 }
  0x2d   : > { %1133 = vmatpush1.bf16.msra.mxu0 %v1132_v24  ;;  %v1105_v60 = vld [vmem:[%s1304_s17 + $0x16] ss:$8 sm:$0x3]  ;;  %v1110_v1 = vld [vmem:[%s1304_s17 + $0x7] ss:$8 sm:$0x3]  ;;  %v1371_v10 = vmul.f32 %v1099_v54, %v351_v33  ;;  %v1373_v11 = vmul.f32 %v1104_v59, %v351_v33  ;;  %v618_v22 = vrot.slane %v1358_v4, %v1321_v41  ;;  %v687_v23 = vrot.slane %v1360_v5, %v1321_v41 }
  0x2e   : > { %v1111_v2 = vld [vmem:[%s1304_s17 + $0x17] ss:$8 sm:$0x3]  ;;  %s891_s24 = smul.f32 0.0, %s1296_s11  ;;  %v1375_v12 = vmul.f32 %v1105_v60, %v351_v33  ;;  %v1377_v13 = vmul.f32 %v1110_v1, %v351_v33  ;;  %v694_v24 = vrot.slane %v1362_v6, %v1321_v41  ;;  %v763_v28 = vrot.slane %v1369_v9, %v1321_v41 }
  0x2f   : > { %v1379_v14 = vmul.f32 %v1111_v2, %v351_v33  ;;  %v770_v29 = vrot.slane %v1371_v10, %v1321_v41  ;;  %v839_v30 = vrot.slane %v1373_v11, %v1321_v41 }
  0x30   : > { %1069 = vmatmul.mubr.msk.f32.vlgmr.msra.gmra.mrb[0].mxu0 %vm265_vm0, %v1156_v25  ;;  %v1400_v25 = vstv %s891_s24  ;;  %v846_v31 = vrot.slane %v1375_v12, %v1321_v41  ;;  %v919_v32 = vrot.slane %v1377_v13, %v1321_v41 }
  0x31   : > { %v926_v33 = vrot.slane %v1379_v14, %v1321_v41 }
 0x103   : > { %v334_v15 = vpop.f32.mrb[0].mxu0 }
 0x104   : > { %v336_v20 = vpop.f32.mrb[1].mxu0 }
 0x105   : > { %v1402_v26 = vcombine.low %v334_v15, %v336_v20  ;;  %v1404_v27 = vcombine.high %v334_v15, %v336_v20 }
 0x107   : > { %v1419_v34 = vmul.f32 %v345_v49, %v1402_v26  ;;  %v1422_v35 = vmul.f32 %v345_v49, %v1404_v27  ;;  %v1425_v36 = vmul.f32 %v416_v50, %v1402_v26  ;;  %v1428_v37 = vmul.f32 %v416_v50, %v1404_v27 }
 0x108   : > { %v1431_v38 = vmul.f32 %v420_v57, %v1402_v26  ;;  %v1434_v39 = vmul.f32 %v420_v57, %v1404_v27  ;;  %v1437_v40 = vmul.f32 %v498_v58, %v1402_v26  ;;  %v1440_v42 = vmul.f32 %v498_v58, %v1404_v27 }
 0x109   : > { %v372_v43 = vadd.f32 %v362_v55, %v1419_v34  ;;  %v373_v44 = vadd.f32 %v369_v56, %v1422_v35  ;;  %v503_v45 = vmul.f32 %v502_v62, %v1402_v26  ;;  %v504_v46 = vmul.f32 %v502_v62, %v1404_v27 }
 0x10a   : > { %v1072_v47 = vrot.slane %v1431_v38, 9  ;;  %v1073_v48 = vrot.slane %v1434_v39, 9  ;;  %v581_v49 = vmul.f32 %v580_v17, %v1402_v26  ;;  %v582_v50 = vmul.f32 %v580_v17, %v1404_v27 }
 0x10b   : > { %v382_v51 = vrot.slane %v372_v43, %v1348_v61  ;;  %v396_v52 = vrot.slane %v373_v44, %v1348_v61  ;;  %v1078_v53 = vrot.slane %v503_v45, 9  ;;  %v1079_v54 = vrot.slane %v504_v46, 9 }
 0x10c   : > { %v431_v55 = vadd.f32 %v1072_v47, %v1425_v36  ;;  %v432_v56 = vadd.f32 %v1073_v48, %v1428_v37  ;;  %v585_v57 = vmul.f32 %v584_v18, %v1402_v26  ;;  %v586_v58 = vmul.f32 %v584_v18, %v1404_v27 }
 0x10d   : > { %v389_v59 = vrot.slane %v382_v51, %v1348_v61  ;;  %v403_v60 = vrot.slane %v396_v52, %v1348_v61  ;;  %v513_v62 = vadd.f32 %v1078_v53, %v1437_v40  ;;  %v514_v63 = vadd.f32 %v1079_v54, %v1440_v42 }
 0x10e   : > { %v457_v1 = vadd.f32 %v447_v3, %v431_v55  ;;  %v458_v2 = vadd.f32 %v454_v7, %v432_v56  ;;  %v1084_v4 = vrot.slane %v585_v57, 9  ;;  %v1085_v15 = vrot.slane %v586_v58, 9 }
 0x10f   : > { %410 = vst.msk [vmem:[%s1457_s27] ss:$8 sm:$0x3] %vm1390_vm1, %v389_v59  ;;  %v539_v17 = vadd.f32 %v529_v8, %v513_v62  ;;  %v540_v20 = vadd.f32 %v536_v16, %v514_v63  ;;  %v1090_v43 = vrot.slane %v581_v49, 9  ;;  %v1091_v44 = vrot.slane %v582_v50, 9 }
 0x110   : > { %1071 = vst.msk [vmem:[%s1457_s27 + $0x10] ss:$8 sm:$0x3] %vm1390_vm1, %v403_v60  ;;  %v467_v18 = vrot.slane %v457_v1, %v1348_v61  ;;  %v481_v47 = vrot.slane %v458_v2, %v1348_v61  ;;  %v595_v48 = vadd.f32 %v1084_v4, %v581_v49  ;;  %v596_v3 = vadd.f32 %v1085_v15, %v582_v50 }
 0x111   : > { %v549_v7 = vrot.slane %v539_v17, %v1348_v61  ;;  %v563_v51 = vrot.slane %v540_v20, %v1348_v61  ;;  %v671_v52 = vadd.f32 %v1090_v43, %v585_v57  ;;  %v672_v8 = vadd.f32 %v1091_v44, %v586_v58 }
 0x112   : > { %v474_v16 = vrot.slane %v467_v18, %v1348_v61  ;;  %v488_v53 = vrot.slane %v481_v47, %v1348_v61  ;;  %v621_v54 = vadd.f32 %v611_v19, %v595_v48  ;;  %v622_v55 = vadd.f32 %v618_v22, %v596_v3 }
 0x113   : > { %v556_v49 = vrot.slane %v549_v7, %v1348_v61  ;;  %v570_v50 = vrot.slane %v563_v51, %v1348_v61  ;;  %v697_v56 = vadd.f32 %v687_v23, %v671_v52  ;;  %v698_v57 = vadd.f32 %v694_v24, %v672_v8 }
 0x114   : > { %1076 = vst.msk [vmem:[%s1457_s27 + $0x1] ss:$8 sm:$0x3] %vm1390_vm1, %v474_v16  ;;  %v631_v0 = vrot.slane %v621_v54, %v1348_v61  ;;  %v646_v19 = vrot.slane %v622_v55, %v1348_v61  ;;  %v1096_v22 = vrot.slane %v1437_v40, 9  ;;  %v1097_v58 = vrot.slane %v1440_v42, 9 }
 0x115   : > { %1077 = vst.msk [vmem:[%s1457_s27 + $0x11] ss:$8 sm:$0x3] %vm1390_vm1, %v488_v53  ;;  %1082 = vst.msk [vmem:[%s1457_s27 + $0x2] ss:$8 sm:$0x3] %vm1390_vm1, %v556_v49  ;;  %v707_v5 = vrot.slane %v697_v56, %v1348_v61  ;;  %v722_v6 = vrot.slane %v698_v57, %v1348_v61 }
 0x116   : > { %v1102_v23 = vrot.slane %v1425_v36, 9  ;;  %v1103_v24 = vrot.slane %v1428_v37, 9  ;;  %1083 = vst.msk [vmem:[%s1457_s27 + $0x12] ss:$8 sm:$0x3] %vm1390_vm1, %v570_v50  ;;  %v632_v40 = vcombine.high %v631_v0, %v631_v0  ;;  %v647_v42 = vcombine.high %v646_v19, %v646_v19 }
 0x117   : > { %v747_v59 = vadd.f32 %v1096_v22, %v503_v45  ;;  %v748_v60 = vadd.f32 %v1097_v58, %v504_v46  ;;  %v708_v62 = vcombine.high %v707_v5, %v707_v5  ;;  %v723_v63 = vcombine.high %v722_v6, %v722_v6 }
 0x118   : > { %v823_v1 = vadd.f32 %v1102_v23, %v1431_v38  ;;  %v824_v2 = vadd.f32 %v1103_v24, %v1434_v39  ;;  %v639_v36 = vrot.slane %v632_v40, %v1348_v61  ;;  %v654_v37 = vrot.slane %v647_v42, %v1348_v61 }
 0x119   : > { %v773_v4 = vadd.f32 %v763_v28, %v747_v59  ;;  %v774_v45 = vadd.f32 %v770_v29, %v748_v60  ;;  %v715_v46 = vrot.slane %v708_v62, %v1348_v61  ;;  %v730_v38 = vrot.slane %v723_v63, %v1348_v61 }
 0x11a   : > { %v849_v39 = vadd.f32 %v839_v30, %v823_v1  ;;  %v850_v15 = vadd.f32 %v846_v31, %v824_v2  ;;  %1088 = vst.msk [vmem:[%s1457_s27 + $0x3] ss:$8 sm:$0x3] %vm1390_vm1, %v639_v36  ;;  %v893_v28 = vmul.f32 %v1400_v25, %v1402_v26  ;;  %v894_v29 = vmul.f32 %v1400_v25, %v1404_v27 }
 0x11b   : > { %v783_v9 = vrot.slane %v773_v4, %v1348_v61  ;;  %v798_v10 = vrot.slane %v774_v45, %v1348_v61  ;;  %1089 = vst.msk [vmem:[%s1457_s27 + $0x13] ss:$8 sm:$0x3] %vm1390_vm1, %v654_v37  ;;  %1094 = vst.msk [vmem:[%s1457_s27 + $0x4] ss:$8 sm:$0x3] %vm1390_vm1, %v715_v46 }
 0x11c   : > { %v859_v11 = vrot.slane %v849_v39, %v1348_v61  ;;  %v874_v12 = vrot.slane %v850_v15, %v1348_v61  ;;  %v1108_v30 = vrot.slane %v1419_v34, 9  ;;  %v1109_v31 = vrot.slane %v1422_v35, 9  ;;  %1095 = vst.msk [vmem:[%s1457_s27 + $0x14] ss:$8 sm:$0x3] %vm1390_vm1, %v730_v38 }
 0x11d   : > { %v790_v25 = vrot.slane %v783_v9, %v1348_v61  ;;  %v805_v26 = vrot.slane %v798_v10, %v1348_v61 }
 0x11e   : > { %v866_v27 = vrot.slane %v859_v11, %v1348_v61  ;;  %v881_v17 = vrot.slane %v874_v12, %v1348_v61  ;;  %v903_v20 = vadd.f32 %v1108_v30, %v893_v28  ;;  %v904_v43 = vadd.f32 %v1109_v31, %v894_v29 }
 0x11f   : > { %v791_v44 = vcombine.high %v790_v25, %v790_v25  ;;  %v806_v34 = vcombine.high %v805_v26, %v805_v26 }
 0x120   : > { %v867_v35 = vcombine.high %v866_v27, %v866_v27  ;;  %v882_v18 = vcombine.high %v881_v17, %v881_v17  ;;  %v929_v47 = vadd.f32 %v919_v32, %v903_v20  ;;  %v930_v48 = vadd.f32 %v926_v33, %v904_v43 }
 0x121   : > { %1100 = vst.msk [vmem:[%s1457_s27 + $0x5] ss:$8 sm:$0x3] %vm1390_vm1, %v791_v44  ;;  %1101 = vst.msk [vmem:[%s1457_s27 + $0x15] ss:$8 sm:$0x3] %vm1390_vm1, %v806_v34 }
 0x122   : > { %1106 = vst.msk [vmem:[%s1457_s27 + $0x6] ss:$8 sm:$0x3] %vm1390_vm1, %v867_v35  ;;  %v939_v3 = vrot.slane %v929_v47, %v1348_v61  ;;  %v954_v7 = vrot.slane %v930_v48, %v1348_v61  ;;  %1107 = vst.msk [vmem:[%s1457_s27 + $0x16] ss:$8 sm:$0x3] %vm1390_vm1, %v882_v18 }
 0x124   : > { %v946_v13 = vrot.slane %v939_v3, %v1348_v61  ;;  %v961_v41 = vrot.slane %v954_v7, %v1348_v61 }
 0x126   : > { %v947_v14 = vcombine.high %v946_v13, %v946_v13  ;;  %v962_v32 = vcombine.high %v961_v41, %v961_v41 }
 0x128   : > { %1112 = vst.msk [vmem:[%s1457_s27 + $0x7] ss:$8 sm:$0x3] %vm1390_vm1, %v947_v14  ;;  %1113 = vst.msk [vmem:[%s1457_s27 + $0x17] ss:$8 sm:$0x3] %vm1390_vm1, %v962_v32 }
 0x129 PF: > { %s15_s15 = sadd.s32 1, %s1182_s15  }
 0x12a   : > { %p12_p1 = scmp.ge.s32.totalorder %s15_s15, 6  }
 0x12c   :  { %14 = sbr.rel (!%p12_p1) target bundleno = 1 (0x1), region = 104 }
 0x133   :  { %995 = vsyncpa [#allocation3], 1 }
 0x134   :  { %997 = vsyncpa [#allocation3 + $0x1], 1 }

</bundles_post_ra>
